<compile_context>
chip_gen: v5e
topology: v5e:2x2
jax: 0.10.0
libtpu: 0.0.40
codegen_flags: <defaults>
</compile_context>

<pallas_src>
import functools
import math

import jax
import jax.numpy as jnp
from jax.experimental import pallas as pl
from jax.experimental.pallas import tpu as pltpu


def _round_up(x, m):
    return ((x + m - 1) // m) * m


def _nll_quad_kernel(n, t, cd_ref, c1_ref, c2_ref, yhat_ref, y_ref, out_ref, acc_ref):
    """cd_ref/c1_ref/c2_ref: VMEM (4, 1) f32 quadratic-form coefficient columns:
         cd = [S00, S11, S22, S33]
         c1 = [S01+S10, S12+S21, S23+S32, S30+S03]   (pairs of e * roll1(e))
         c2 = [S02+S20, S13+S31, 0, 0]               (pairs of e * roll2(e))
       yhat_ref, y_ref: VMEM (4, t) lane-dense residual tiles (native layout).
       out_ref: (1, 1) scalar quadratic-form sum.
       acc_ref: VMEM (4, t) resident elementwise accumulator."""
    i = pl.program_id(0)
    nsteps = pl.num_programs(0)

    @pl.when(i == 0)
    def _init():
        acc_ref[...] = jnp.zeros_like(acc_ref)

    e = y_ref[...].astype(jnp.float32) - yhat_ref[...].astype(jnp.float32)  # (4, t)

    # Circular sublane shifts (static concat-of-slices == jnp.roll static path).
    e_s1 = jnp.concatenate([e[1:, :], e[:1, :]], axis=0)   # rows [e1, e2, e3, e0]
    e_s2 = jnp.concatenate([e[2:, :], e[:2, :]], axis=0)   # rows [e2, e3, e0, e1]

    # Row-sum of contrib == e^T Sigma^{-1} e for every sample (lane).
    contrib = (cd_ref[...] * (e * e)
               + c1_ref[...] * (e * e_s1)
               + c2_ref[...] * (e * e_s2))                  # (4, t)

    @pl.when(i < nsteps - 1)
    def _accumulate_full():
        acc_ref[...] += contrib

    @pl.when(i == nsteps - 1)
    def _accumulate_tail_and_finalize():
        # Only the final block can be partial: mask lanes with global index >= n.
        lane = jax.lax.broadcasted_iota(jnp.int32, (1, t), 1)
        valid = (i * t + lane) < n
        acc_ref[...] += jnp.where(valid, contrib, jnp.float32(0.0))
        out_ref[...] = jnp.sum(acc_ref[...]).reshape(1, 1)


def parametric_loss(y_hat, y, sigma_hat, *, tile=131072):
    """y_hat, y: (4, N) float; sigma_hat: (4, 4) PD float. Returns scalar loss."""
    d, n = y.shape
    assert d == 4, "parametricLoss is defined for 4-dimensional residuals"

    # Lane-dense tile: multiple of 128, no bigger than needed, default sized so
    # double-buffered inputs + accumulator stay well inside scoped VMEM.
    tile = max(128, (int(tile) // 128) * 128)
    t = min(tile, _round_up(n, 128))
    grid = pl.cdiv(n, t)

    sig = sigma_hat.astype(jnp.float32)
    # Glue (4x4 linear algebra): Sigma^{-1} and log|Sigma| via Cholesky,
    # matching torch.distributions.MultivariateNormal.
    chol = jnp.linalg.cholesky(sig)
    logdet = 2.0 * jnp.sum(jnp.log(jnp.diag(chol)))
    sinv = jnp.linalg.inv(sig)

    zero = jnp.zeros((), jnp.float32)
    col_d = jnp.stack([sinv[0, 0], sinv[1, 1], sinv[2, 2], sinv[3, 3]])
    col_1 = jnp.stack([sinv[0, 1] + sinv[1, 0], sinv[1, 2] + sinv[2, 1],
                       sinv[2, 3] + sinv[3, 2], sinv[3, 0] + sinv[0, 3]])
    col_2 = jnp.stack([sinv[0, 2] + sinv[2, 0], sinv[1, 3] + sinv[3, 1], zero, zero])
    cd = col_d.reshape(4, 1).astype(jnp.float32)
    c1 = col_1.reshape(4, 1).astype(jnp.float32)
    c2 = col_2.reshape(4, 1).astype(jnp.float32)

    kernel = functools.partial(_nll_quad_kernel, n, t)

    quad_sum = pl.pallas_call(
        kernel,
        out_shape=jax.ShapeDtypeStruct((1, 1), jnp.float32),
        grid_spec=pltpu.PrefetchScalarGridSpec(
            num_scalar_prefetch=0,
            grid=(grid,),
            in_specs=[
                pl.BlockSpec((d, 1), lambda i: (0, 0)),    # cd  (4, 1)
                pl.BlockSpec((d, 1), lambda i: (0, 0)),    # c1  (4, 1)
                pl.BlockSpec((d, 1), lambda i: (0, 0)),    # c2  (4, 1)
                pl.BlockSpec((d, t), lambda i: (0, i)),    # y_hat (4, N)
                pl.BlockSpec((d, t), lambda i: (0, i)),    # y     (4, N)
            ],
            out_specs=pl.BlockSpec((1, 1), lambda i: (0, 0)),
            scratch_shapes=[pltpu.VMEM((d, t), jnp.float32)],   # elementwise accum
        ),
        compiler_params=pltpu.CompilerParams(
            dimension_semantics=("arbitrary",)),
    )(cd, c1, c2, y_hat, y)[0, 0]

    return 0.5 * (quad_sum / n + d * jnp.float32(math.log(2.0 * math.pi)) + logdet)


def parametric_loss_ref(y_hat, y, sigma_hat):
    """Pure-JAX reference (mirrors torch MVN negative log-likelihood mean)."""
    ei = (y - y_hat).T.astype(jnp.float32)                       # (N, 4)
    d = ei.shape[-1]
    sinv = jnp.linalg.inv(sigma_hat.astype(jnp.float32))
    chol = jnp.linalg.cholesky(sigma_hat.astype(jnp.float32))
    logdet = 2.0 * jnp.sum(jnp.log(jnp.diag(chol)))
    quad = jnp.einsum("nd,de,ne->n", ei, sinv, ei)
    nll = 0.5 * (quad + d * jnp.log(2.0 * jnp.pi) + logdet)
    return jnp.mean(nll)


if __name__ == "__main__":
    key = jax.random.PRNGKey(0)
    D = 4

    # Deterministic positive-definite covariance.
    ka = jax.random.fold_in(key, 99)
    a = jax.random.normal(ka, (D, D), dtype=jnp.float32)
    sigma_hat = a @ a.T + 0.5 * jnp.eye(D, dtype=jnp.float32)

    # Small cases: aligned, non-multiple-of-128 tail, and multi-grid-step accumulation.
    cases = [(256, None), (200, None), (1000, 256)]
    for idx, (N, tl) in enumerate(cases):
        k1 = jax.random.fold_in(key, 2 * idx)
        k2 = jax.random.fold_in(key, 2 * idx + 1)
        y_hat = jax.random.normal(k1, (D, N), dtype=jnp.float32)
        y = jax.random.normal(k2, (D, N), dtype=jnp.float32)

        if tl is None:
            loss = jax.block_until_ready(parametric_loss(y_hat, y, sigma_hat))
        else:
            loss = jax.block_until_ready(parametric_loss(y_hat, y, sigma_hat, tile=tl))
        ref = jax.block_until_ready(parametric_loss_ref(y_hat, y, sigma_hat))
        assert jnp.allclose(loss, ref, rtol=1e-5, atol=1e-5), (N, loss, ref)

    print("KERNEL_OK")
</pallas_src>

<mosaic_0001>
module attributes {stable_mosaic.version = 11 : i64} {
  func.func @_nll_quad_kernel(%arg0: i32, %arg1: memref<4x1xf32, #tpu.memory_space<vmem>>, %arg2: memref<4x1xf32, #tpu.memory_space<vmem>>, %arg3: memref<4x1xf32, #tpu.memory_space<vmem>>, %arg4: memref<4x256xf32, #tpu.memory_space<vmem>>, %arg5: memref<4x256xf32, #tpu.memory_space<vmem>>, %arg6: memref<1x1xf32, #tpu.memory_space<vmem>>, %arg7: memref<4x256xf32, #tpu.memory_space<vmem>>) attributes {dimension_semantics = [#tpu.dimension_semantics<arbitrary>], iteration_bounds = array<i64: 1>, scalar_prefetch = 0 : i64, scratch_operands = 1 : i64, tpu.core_type = #tpu.core_type<tc>, window_params = [{pipeline_mode = #tpu.pipeline_mode<synchronous>, transform_indices = @transform_0, window_bounds = array<i64: 4, 1>}, {pipeline_mode = #tpu.pipeline_mode<synchronous>, transform_indices = @transform_1, window_bounds = array<i64: 4, 1>}, {pipeline_mode = #tpu.pipeline_mode<synchronous>, transform_indices = @transform_2, window_bounds = array<i64: 4, 1>}, {transform_indices = @transform_3, window_bounds = array<i64: 4, 256>}, {transform_indices = @transform_4, window_bounds = array<i64: 4, 256>}, {pipeline_mode = #tpu.pipeline_mode<synchronous>, transform_indices = @transform_5, window_bounds = array<i64: 1, 1>}]} {
    %c0_i32 = arith.constant 0 : i32
    %0 = arith.cmpi eq, %arg0, %c0_i32 : i32
    %1 = arith.extui %0 : i1 to i32
    %c0_i32_0 = arith.constant 0 : i32
    %2 = arith.cmpi ne, %1, %c0_i32_0 : i32
    scf.if %2 {
      %cst = arith.constant 0.000000e+00 : f32
      %32 = vector.broadcast %cst : f32 to vector<4x256xf32>
      %c0_14 = arith.constant 0 : index
      %c0_15 = arith.constant 0 : index
      %33 = vector.load %arg7[%c0_14, %c0_15] : memref<4x256xf32, #tpu.memory_space<vmem>>, vector<4x256xf32>
      tpu.vector_store %arg7[%c0_14, %c0_15], %32 {strides = array<i32>} : memref<4x256xf32, #tpu.memory_space<vmem>>, vector<4x256xf32>,
    } else {
    }
    %c0 = arith.constant 0 : index
    %c0_1 = arith.constant 0 : index
    %3 = vector.load %arg5[%c0, %c0_1] : memref<4x256xf32, #tpu.memory_space<vmem>>, vector<4x256xf32>
    %c0_2 = arith.constant 0 : index
    %c0_3 = arith.constant 0 : index
    %4 = vector.load %arg4[%c0_2, %c0_3] : memref<4x256xf32, #tpu.memory_space<vmem>>, vector<4x256xf32>
    %5 = arith.subf %3, %4 : vector<4x256xf32>
    %6 = vector.extract_strided_slice %5 {offsets = [1, 0], sizes = [3, 256], strides = [1, 1]} : vector<4x256xf32> to vector<3x256xf32>
    %7 = vector.extract_strided_slice %5 {offsets = [0, 0], sizes = [1, 256], strides = [1, 1]} : vector<4x256xf32> to vector<1x256xf32>
    %8 = tpu.concatenate %6, %7 in 0 : vector<3x256xf32>, vector<1x256xf32> -> vector<4x256xf32>
    %9 = vector.extract_strided_slice %5 {offsets = [2, 0], sizes = [2, 256], strides = [1, 1]} : vector<4x256xf32> to vector<2x256xf32>
    %10 = vector.extract_strided_slice %5 {offsets = [0, 0], sizes = [2, 256], strides = [1, 1]} : vector<4x256xf32> to vector<2x256xf32>
    %11 = tpu.concatenate %9, %10 in 0 : vector<2x256xf32>, vector<2x256xf32> -> vector<4x256xf32>
    %c0_4 = arith.constant 0 : index
    %c0_5 = arith.constant 0 : index
    %12 = vector.load %arg1[%c0_4, %c0_5] : memref<4x1xf32, #tpu.memory_space<vmem>>, vector<4x1xf32>
    %13 = arith.mulf %5, %5 : vector<4x256xf32>
    %14 = vector.broadcast %12 : vector<4x1xf32> to vector<4x256xf32>
    %15 = arith.mulf %14, %13 : vector<4x256xf32>
    %c0_6 = arith.constant 0 : index
    %c0_7 = arith.constant 0 : index
    %16 = vector.load %arg2[%c0_6, %c0_7] : memref<4x1xf32, #tpu.memory_space<vmem>>, vector<4x1xf32>
    %17 = arith.mulf %5, %8 : vector<4x256xf32>
    %18 = vector.broadcast %16 : vector<4x1xf32> to vector<4x256xf32>
    %19 = arith.mulf %18, %17 : vector<4x256xf32>
    %20 = arith.addf %15, %19 : vector<4x256xf32>
    %c0_8 = arith.constant 0 : index
    %c0_9 = arith.constant 0 : index
    %21 = vector.load %arg3[%c0_8, %c0_9] : memref<4x1xf32, #tpu.memory_space<vmem>>, vector<4x1xf32>
    %22 = arith.mulf %5, %11 : vector<4x256xf32>
    %23 = vector.broadcast %21 : vector<4x1xf32> to vector<4x256xf32>
    %24 = arith.mulf %23, %22 : vector<4x256xf32>
    %25 = arith.addf %20, %24 : vector<4x256xf32>
    %c0_i32_10 = arith.constant 0 : i32
    %26 = arith.cmpi slt, %arg0, %c0_i32_10 : i32
    %27 = arith.extui %26 : i1 to i32
    %c0_i32_11 = arith.constant 0 : i32
    %28 = arith.cmpi ne, %27, %c0_i32_11 : i32
    scf.if %28 {
      %c0_14 = arith.constant 0 : index
      %c0_15 = arith.constant 0 : index
      %32 = vector.load %arg7[%c0_14, %c0_15] : memref<4x256xf32, #tpu.memory_space<vmem>>, vector<4x256xf32>
      %33 = arith.addf %32, %25 : vector<4x256xf32>
      %c0_16 = arith.constant 0 : index
      %c0_17 = arith.constant 0 : index
      %34 = vector.load %arg7[%c0_16, %c0_17] : memref<4x256xf32, #tpu.memory_space<vmem>>, vector<4x256xf32>
      tpu.vector_store %arg7[%c0_16, %c0_17], %33 {strides = array<i32>} : memref<4x256xf32, #tpu.memory_space<vmem>>, vector<4x256xf32>,
    } else {
    }
    %c0_i32_12 = arith.constant 0 : i32
    %29 = arith.cmpi eq, %arg0, %c0_i32_12 : i32
    %30 = arith.extui %29 : i1 to i32
    %c0_i32_13 = arith.constant 0 : i32
    %31 = arith.cmpi ne, %30, %c0_i32_13 : i32
    scf.if %31 {
      %32 = tpu.iota {dimensions = array<i32: 1>} : vector<1x256xi32>
      %c256_i32 = arith.constant 256 : i32
      %33 = arith.muli %arg0, %c256_i32 : i32
      %34 = vector.broadcast %33 : i32 to vector<1x256xi32>
      %35 = arith.addi %34, %32 : vector<1x256xi32>
      %c256_i32_14 = arith.constant 256 : i32
      %36 = vector.broadcast %c256_i32_14 : i32 to vector<1x256xi32>
      %37 = arith.cmpi slt, %35, %36 : vector<1x256xi32>
      %c0_15 = arith.constant 0 : index
      %c0_16 = arith.constant 0 : index
      %38 = vector.load %arg7[%c0_15, %c0_16] : memref<4x256xf32, #tpu.memory_space<vmem>>, vector<4x256xf32>
      %cst = arith.constant 0.000000e+00 : f32
      %39 = vector.shape_cast %37 : vector<1x256xi1> to vector<1x256xi1>
      %40 = vector.broadcast %39 : vector<1x256xi1> to vector<4x256xi1>
      %41 = vector.broadcast %cst : f32 to vector<4x256xf32>
      %42 = arith.select %40, %25, %41 : vector<4x256xi1>, vector<4x256xf32>
      %43 = arith.addf %38, %42 : vector<4x256xf32>
      %c0_17 = arith.constant 0 : index
      %c0_18 = arith.constant 0 : index
      %44 = vector.load %arg7[%c0_17, %c0_18] : memref<4x256xf32, #tpu.memory_space<vmem>>, vector<4x256xf32>
      tpu.vector_store %arg7[%c0_17, %c0_18], %43 {strides = array<i32>} : memref<4x256xf32, #tpu.memory_space<vmem>>, vector<4x256xf32>,
      %c0_19 = arith.constant 0 : index
      %c0_20 = arith.constant 0 : index
      %45 = vector.load %arg7[%c0_19, %c0_20] : memref<4x256xf32, #tpu.memory_space<vmem>>, vector<4x256xf32>
      %46 = vector.shape_cast %45 : vector<4x256xf32> to vector<1x4x256xf32>
      %cst_21 = arith.constant dense<0.000000e+00> : vector<1xf32>
      %47 = vector.multi_reduction <add>, %46, %cst_21 [1, 2] : vector<1x4x256xf32> to vector<1xf32>
      %48 = vector.shape_cast %47 : vector<1xf32> to vector<1x1x1xf32>
      %49 = vector.extract %48[0, 0, 0] : f32 from vector<1x1x1xf32>
      %50 = vector.broadcast %49 : f32 to vector<1x1xf32>
      %c0_22 = arith.constant 0 : index
      %c0_23 = arith.constant 0 : index
      %51 = vector.load %arg6[%c0_22, %c0_23] : memref<1x1xf32, #tpu.memory_space<vmem>>, vector<1x1xf32>
      tpu.vector_store %arg6[%c0_22, %c0_23], %50 {strides = array<i32>} : memref<1x1xf32, #tpu.memory_space<vmem>>, vector<1x1xf32>,
    } else {
    }
    return
  }
  func.func @transform_0(%arg0: i32) -> (i32, i32) {
    %c0_i32 = arith.constant 0 : i32
    %c0_i32_0 = arith.constant 0 : i32
    %c0_i32_1 = arith.constant 0 : i32
    return %c0_i32, %c0_i32_0 : i32, i32
  }
  func.func @transform_1(%arg0: i32) -> (i32, i32) {
    %c0_i32 = arith.constant 0 : i32
    %c0_i32_0 = arith.constant 0 : i32
    %c0_i32_1 = arith.constant 0 : i32
    return %c0_i32, %c0_i32_0 : i32, i32
  }
  func.func @transform_2(%arg0: i32) -> (i32, i32) {
    %c0_i32 = arith.constant 0 : i32
    %c0_i32_0 = arith.constant 0 : i32
    %c0_i32_1 = arith.constant 0 : i32
    return %c0_i32, %c0_i32_0 : i32, i32
  }
  func.func @transform_3(%arg0: i32) -> (i32, i32) {
    %c0_i32 = arith.constant 0 : i32
    %c0_i32_0 = arith.constant 0 : i32
    return %c0_i32, %arg0 : i32, i32
  }
  func.func @transform_4(%arg0: i32) -> (i32, i32) {
    %c0_i32 = arith.constant 0 : i32
    %c0_i32_0 = arith.constant 0 : i32
    return %c0_i32, %arg0 : i32, i32
  }
  func.func @transform_5(%arg0: i32) -> (i32, i32) {
    %c0_i32 = arith.constant 0 : i32
    %c0_i32_0 = arith.constant 0 : i32
    %c0_i32_1 = arith.constant 0 : i32
    return %c0_i32, %c0_i32_0 : i32, i32
  }
}

</mosaic_0001>

<bundles_post_ra>
// kernel: tpu_custom_call.1
= control target key start
LH: loop header
LB: loop body
LE: loop exit
PB: predicated region body
PF: predicated region fallthrough
CT: control target
= control target key end

     0   :  { %10 = vsyncpa [#allocation4], 0  ;;  %s327_s0 = inlined_call_operand.vmem [shape: f32[4,1], index: 0, kind: input, shape index: {}]   ;;  %s328_s1 = inlined_call_operand.vmem [shape: f32[4,1], index: 1, kind: input, shape index: {}]   ;;  %s329_s2 = inlined_call_operand.vmem [shape: f32[4,1], index: 2, kind: input, shape index: {}]   ;;  %s330_s3 = inlined_call_operand.vmem [shape: f32[4,256], index: 3, kind: input, shape index: {}]   ;;  %s331_s4 = inlined_call_operand.hbm [shape: f32[4,256], index: 4, kind: input, shape index: {}]   ;;  %s332_s5 = inlined_call_operand.hbm [shape: f32[1,1], index: 5, kind: output, shape index: {}]  }
   0x1   :  { %11 = vsyncpa [#allocation5], 0  ;;  %s25_s20 = sshll.u32 %s331_s4, 4  ;;  %s271_s21 = smov [#allocation3]   ;;  %s26_s20 = int_to_ptr.hbm [resolvable:$true] %s25_s20 }
   0x2   :  { %s27_s22 = sshll.u32 %s271_s21, 4  ;;  %s28_s22 = int_to_ptr.vmem [resolvable:$true] %s27_s22 }
   0x3   :  { %30 = dma.hbm_to_vmem [thread:$0]  %s26_s20, 128, %s28_s22, [#allocation4]  }
   0x4   :  { %267 = dma.done.wait [#allocation4], 128  }
   0x5   :  { %268 = vsyncadd [#allocation4], 4294967168  ;;  %v272_v0 = vmov 0   ;;  %v75_v1 = vld [vmem:[%s327_s0] sm:$0xf]  ;;  %v40_v4 = vld [vmem:[#allocation3] sm:$0xff] }
   0x6   :  { %217 = vset.pattern.permute.xlu0 %v272_v0  ;;  %218 = vset.pattern.permute.xlu1 %v272_v0  ;;  %v113_v2 = vld [vmem:[%s329_s2] sm:$0xf]  ;;  %vm55_vm0 = vcmask 1042432   ;;  %vm94_vm1 = vcmask 1043456   ;;  %vm72_vm2 = vcmask 1041408   ;;  %s273_s0 = smov [#allocation6]  }
   0x7   :  { %79 = vperm.xlu0 %217, %v75_v1   ;;  %122 = vperm.xlu1 %218, %v113_v2   ;;  %v90_v3 = vld [vmem:[%s328_s1] sm:$0xf]  ;;  %s200_s1 = sshll.u32 %s273_s0, 4  ;;  %s202_s30 = sshll.u32 %s332_s5, 4  ;;  %vm193_vm3 = vcmask 0   ;;  %s201_s1 = int_to_ptr.vmem [resolvable:$true] %s200_s1  ;;  %s203_s30 = int_to_ptr.hbm [resolvable:$true] %s202_s30 }
   0x8   :  { %v41_v5 = vld [vmem:[%s330_s3] sm:$0xff] }
   0x9   :  { %v42_v6 = vsub.f32 %v40_v4, %v41_v5 }
   0xb   :  { %44 = vst [vmem:[#allocation1] ss:$2 sm:$0xff] %v42_v6  ;;  %v76_v11 = vmul.f32 %v42_v6, %v42_v6  ;;  %v52_v15 = vperm.slane %v42_v6, 4  ;;  %v51_v17 = vperm.slane %v42_v6, 0 }
   0xf   :  { %100 = vperm.xlu0 %217, %v90_v3  }
  0x12   :  { %v45_v7 = vld.sshfl [vmem:[#allocation1] sm:$0xff pattern:$0x75316420]  ;;  %v46_v8 = vld.sshfl [vmem:[#allocation1 + $0x8] sm:$0xff pattern:$0x75316420] }
  0x13   :  { %58 = vst [vmem:[#allocation1] ss:$2 sm:$0xff] %v42_v6  ;;  %v48_v14 = vrot.slane %v46_v8, 1  ;;  %v47_v16 = vrot.slane %v45_v7, 1 }
  0x15   :  { %v57_v18 = vsel %vm55_vm0, %v48_v14, %v52_v15  ;;  %v56_v20 = vsel %vm55_vm0, %v47_v16, %v51_v17 }
  0x16   :  { %v93_v19 = vrot.slane %v57_v18, 4 }
  0x18   :  { %v95_v21 = vsel %vm94_vm1, %v56_v20, %v93_v19 }
  0x19   :  { %v97_v22 = vmul.f32 %v95_v21, %v42_v6 }
  0x1a   :  { %v59_v9 = vld.sshfl [vmem:[#allocation1] sm:$0xff pattern:$0x75316420]  ;;  %v60_v10 = vld.sshfl [vmem:[#allocation1 + $0x8] sm:$0xff pattern:$0x75316420] }
  0x1b   :  { %65 = vst [vmem:[#allocation1] ss:$2 sm:$0xff] %v42_v6  ;;  %v62_v25 = vrot.slane %v60_v10, 2  ;;  %v61_v27 = vrot.slane %v59_v9, 2 }
  0x22   :  { %v66_v12 = vld.sshfl [vmem:[#allocation1] sm:$0xff pattern:$0x75316420]  ;;  %v67_v13 = vld.sshfl [vmem:[#allocation1 + $0x8] sm:$0xff pattern:$0x75316420] }
  0x23   :  { %83 = vst [vmem:[#allocation1] ss:$2 sm:$0xff] %v76_v11  ;;  %v69_v26 = vrot.slane %v67_v13, 6  ;;  %v68_v28 = vrot.slane %v66_v12, 6 }
  0x25   :  { %v74_v29 = vsel %vm72_vm2, %v62_v25, %v69_v26  ;;  %v73_v31 = vsel %vm72_vm2, %v61_v27, %v68_v28 }
  0x26   :  { %v116_v30 = vrot.slane %v74_v29, 4 }
  0x28   :  { %v117_v32 = vsel %vm94_vm1, %v73_v31, %v116_v30 }
  0x29   :  { %v119_v33 = vmul.f32 %v117_v32, %v42_v6 }
  0x2a   :  { %v84_v23 = vld.sshfl [vmem:[#allocation1] sm:$0xff pattern:$0x75316420]  ;;  %v85_v24 = vld.sshfl [vmem:[#allocation1 + $0x8] sm:$0xff pattern:$0x75316420] }
  0x2b   :  { %104 = vst [vmem:[#allocation1] ss:$2 sm:$0xff] %v97_v22 }
  0x32   :  { %v105_v34 = vld.sshfl [vmem:[#allocation1] sm:$0xff pattern:$0x75316420]  ;;  %v106_v35 = vld.sshfl [vmem:[#allocation1 + $0x8] sm:$0xff pattern:$0x75316420] }
  0x33   :  { %126 = vst [vmem:[#allocation1] ss:$2 sm:$0xff] %v119_v33 }
  0x3a   :  { %v128_v38 = vld.sshfl [vmem:[#allocation1 + $0x8] sm:$0xff pattern:$0x75316420]  ;;  %v127_v41 = vld.sshfl [vmem:[#allocation1] sm:$0xff pattern:$0x75316420] }
  0x79   :  { %v80_v36 = vpop.permute.xlu0 %79  ;;  %v123_v37 = vpop.permute.xlu1 %122 }
  0x7a   :  { %v88_v39 = vmul.f32 %v84_v23, %v80_v36  ;;  %v89_v42 = vmul.f32 %v85_v24, %v80_v36  ;;  %v132_v45 = vmul.f32 %v128_v38, %v123_v37  ;;  %v131_v48 = vmul.f32 %v127_v41, %v123_v37 }
  0x81   :  { %v101_v40 = vpop.permute.xlu0 %100 }
  0x82   :  { %v109_v43 = vmul.f32 %v105_v34, %v101_v40  ;;  %v110_v44 = vmul.f32 %v106_v35, %v101_v40 }
  0x84   :  { %v111_v46 = vadd.f32 %v109_v43, %v88_v39  ;;  %v112_v47 = vadd.f32 %v110_v44, %v89_v42 }
  0x86   :  { %v134_v49 = vadd.f32 %v132_v45, %v112_v47  ;;  %v133_v50 = vadd.f32 %v131_v48, %v111_v46 }
  0x88   :  { %v168_v51 = vrot.slane %v134_v49, 4 }
  0x8a   :  { %v169_v52 = vsel %vm94_vm1, %v133_v50, %v168_v51 }
  0x8b   :  { %175 = vst [vmem:[#allocation1] ss:$2 sm:$0xff] %v169_v52 }
  0x92   :  { %v176_v53 = vld.sshfl [vmem:[#allocation1] sm:$0xff pattern:$0x75316420]  ;;  %v177_v54 = vld.sshfl [vmem:[#allocation1 + $0x8] sm:$0xff pattern:$0x75316420] }
  0x93   :  { %v180_v55 = vsel %vm94_vm1, %v176_v53, 0.0  ;;  %v181_v56 = vsel %vm94_vm1, %v177_v54, 0.0 }
  0x94   :  { %v182_v57 = vadd.f32 %v181_v56, %v180_v55 }
  0x96   :  { %183 = vadd.xlane.f32.xlu1 %v182_v57 }
 0x109   :  { %v184_v58 = vpop.xlane.xlu1 %183 }
 0x10a   :  { %v185_v59 = vrot.slane %v184_v58, 4 }
 0x10c   :  { %v186_v60 = vadd.f32 %v185_v59, %v184_v58 }
 0x10e   :  { %v187_v61 = vrot.slane %v186_v60, 2 }
 0x110   :  { %v188_v62 = vadd.f32 %v187_v61, %v186_v60 }
 0x112   :  { %v189_v63 = vrot.slane %v188_v62, 1 }
 0x114   :  { %v190_v0 = vadd.f32 %v189_v63, %v188_v62 }
 0x116   :  { %212 = vpush %v190_v0 }
 0x147   :  { %s213_s6 = spop %212 }
 0x148   :  { %v192_v1 = vstv %s213_s6 }
 0x149   :  { %194 = vst.msk [vmem:[#allocation6] sm:$0x1] %vm193_vm3, %v192_v1 }
 0x14a   :  { %205 = dma.vmem_to_hbm [thread:$0]  %s201_s1, 16, %s203_s30, [#allocation5]  }
 0x14b   :  { %269 = dma.done.wait [#allocation5], 16  }
 0x14c   :  { %270 = vsyncadd [#allocation5], 4294967280 }
 0x14d   :  { %210 = vsyncpa [#allocation4], 1 }
 0x14e   :  { %211 = vsyncpa [#allocation5], 1 }

</bundles_post_ra>
